<compile_context>
chip_gen: v7x
topology: tpu7x:2x2x1
jax: 0.10.0
libtpu: 0.0.40
codegen_flags: <defaults>
</compile_context>

<pallas_src>
import functools

import jax
import jax.numpy as jnp
from jax.experimental import pallas as pl
from jax.experimental.pallas import tpu as pltpu


def _round_up(x, m):
    return ((x + m - 1) // m) * m


def _vmem_cap_bytes():
    """Generation-aware VMEM budget (physical capacity minus headroom)."""
    cap = 64 << 20  # conservative default = v7x physical VMEM per TensorCore
    try:
        info = pltpu.get_tpu_info()
        cap = int(getattr(info, "vmem_capacity_bytes", cap))
    except Exception:
        pass
    return max(cap - (8 << 20), 24 << 20)


def _choose_row_tile(R, max_tile=256):
    """8-aligned row tile.  Whole (8-rounded) range if it fits in one tile;
    otherwise the largest 128-aligned tile <= max_tile whose padding waste is
    small (avoid padding R=300 up to a full 512-row tile)."""
    R8 = _round_up(R, 8)
    if R8 <= max_tile:
        return R8
    best_tm = 128
    best_padded = _round_up(R, best_tm)
    for cand in (256, 512, 1024):
        if cand > max_tile:
            break
        padded = _round_up(R, cand)
        if padded <= best_padded + best_padded // 16:   # <= ~6% extra padding
            best_tm, best_padded = cand, padded
    return best_tm


def _matmul_vmem_bytes(tm, D, tn, x_bytes, w_bytes, with_ln_scratch):
    """VMEM footprint of one (tm, D) @ (D, tn) step, actual dtypes, including
    the in-kernel f32 temporaries and (optionally) the LN scratch."""
    est = (2 * tm * D * x_bytes        # x tile, double-buffered
           + 2 * D * tn * w_bytes      # weight tile, double-buffered
           + 2 * tn * 4                # f32 bias tile, double-buffered
           + 2 * tm * tn * x_bytes     # output tile, double-buffered
           + 2 * tm * D * 4            # f32 x copy + normalized temp
           + tm * tn * 4)              # f32 accumulator
    if with_ln_scratch:
        est += tm * D * x_bytes        # normalized-y VMEM scratch
    return est


def _plan_tiles(R, D, Dout, x_bytes, w_bytes, cap, row_tile, col_tile,
                with_ln_scratch):
    """Pick (tm, tn).  Prefer tn = padded Dout (weight grid-resident, LN runs
    once per row tile); fall back to 128-aligned column tiles that fit VMEM."""
    tm = _choose_row_tile(R, max_tile=row_tile)
    Dp_full = _round_up(Dout, 128)
    candidates = [Dp_full] + [c for c in (2048, 1024, col_tile, 512, 256, 128)
                              if c < Dp_full and c % 128 == 0]
    tn = None
    for cand in candidates:
        if _matmul_vmem_bytes(tm, D, cand, x_bytes, w_bytes,
                              with_ln_scratch) <= cap:
            tn = cand
            break
    if tn is None:
        tn = 128
        while (_matmul_vmem_bytes(tm, D, tn, x_bytes, w_bytes, with_ln_scratch)
               > cap and tm > 8):
            tm = max(8, _round_up(tm // 2, 8))
    return tm, tn


def fold_layernorm_into_linear(gamma, beta, w, b):
    """(x_hat*gamma + beta) @ W + b == x_hat @ (gamma[:,None]*W) + (beta@W + b).
    Fold in f32, keep the folded weight in the weight's native dtype so the
    MXU sees low-precision operands; keep the folded bias in f32."""
    w32 = w.astype(jnp.float32)
    w_f = (gamma.astype(jnp.float32)[:, None] * w32).astype(w.dtype)
    b_f = beta.astype(jnp.float32) @ w32 + b.astype(jnp.float32)
    return w_f, b_f


# --------------------------------------------------------------------------
# Fused PreNorm(linear) kernel.
#   j == 0 : LayerNorm the (tm, D) row tile (f32 stats, mean(x^2)-mean^2
#            variance) and cache the normalized tile in VMEM in x.dtype.
#   all j  : (tm, D) @ (D, tn) on the MXU from the cached tile, f32 accum.
# gamma/beta are already folded into w/b in the wrapper.
# --------------------------------------------------------------------------
def _prenorm_linear_kernel(x_ref, w_ref, b_ref, o_ref, y_scratch, *, eps):
    @pl.when(pl.program_id(1) == 0)
    def _():
        x = x_ref[...].astype(jnp.float32)                       # (tm, D)
        mean = jnp.mean(x, axis=-1, keepdims=True)               # (tm, 1)
        mean_sq = jnp.mean(x * x, axis=-1, keepdims=True)
        var = jnp.maximum(mean_sq - mean * mean, 0.0)            # biased (torch)
        y = (x - mean) * jax.lax.rsqrt(var + eps)
        y_scratch[...] = y.astype(y_scratch.dtype)

    acc = jnp.dot(y_scratch[...], w_ref[...],
                  preferred_element_type=jnp.float32)            # (tm, tn)
    o_ref[...] = (acc + b_ref[...]).astype(o_ref.dtype)


def prenorm_linear_pallas(x2d, w_f, b_f, *, eps=1e-5, row_tile=256,
                          col_tile=512):
    """Fused LayerNorm + linear.  w_f/b_f already have gamma/beta folded in."""
    R, D = x2d.shape
    Dw, Dout = w_f.shape
    assert Dw == D

    x_bytes = x2d.dtype.itemsize
    w_bytes = w_f.dtype.itemsize
    cap = _vmem_cap_bytes()

    tm, tn = _plan_tiles(R, D, Dout, x_bytes, w_bytes, cap,
                         row_tile, col_tile, with_ln_scratch=True)
    Rp = _round_up(R, tm)
    Dp = _round_up(Dout, tn)

    x_p = x2d if Rp == R else jnp.pad(x2d, ((0, Rp - R), (0, 0)))
    w_p = w_f if Dp == Dout else jnp.pad(w_f, ((0, 0), (0, Dp - Dout)))
    b_p = (b_f if Dp == Dout else jnp.pad(b_f, ((0, Dp - Dout),)))
    b_p = b_p.astype(jnp.float32).reshape(1, Dp)

    est = _matmul_vmem_bytes(tm, D, tn, x_bytes, w_bytes, True)
    vmem_limit = int(min(max(est + (4 << 20), 32 << 20), cap))

    out = pl.pallas_call(
        functools.partial(_prenorm_linear_kernel, eps=eps),
        out_shape=jax.ShapeDtypeStruct((Rp, Dp), x2d.dtype),
        grid_spec=pltpu.PrefetchScalarGridSpec(
            num_scalar_prefetch=0,
            grid=(Rp // tm, Dp // tn),
            in_specs=[
                pl.BlockSpec((tm, D), lambda i, j: (i, 0)),
                pl.BlockSpec((D, tn), lambda i, j: (0, j)),
                pl.BlockSpec((1, tn), lambda i, j: (0, j)),
            ],
            out_specs=pl.BlockSpec((tm, tn), lambda i, j: (i, j)),
            scratch_shapes=[pltpu.VMEM((tm, D), x2d.dtype)],
        ),
        compiler_params=pltpu.CompilerParams(
            # Row tiles shard across v7x's two TensorCores; the column axis
            # must run sequentially within a core for the LN-scratch reuse.
            dimension_semantics=("parallel", "arbitrary"),
            vmem_limit_bytes=vmem_limit,
        ),
    )(x_p, w_p, b_p)
    return out[:R, :Dout]


# --------------------------------------------------------------------------
# Standalone LayerNorm kernel (generic-fn path).  HBM-bound -> big row tiles.
# --------------------------------------------------------------------------
def _layernorm_kernel(x_ref, g_ref, b_ref, o_ref, *, eps):
    x = x_ref[...].astype(jnp.float32)
    mean = jnp.mean(x, axis=-1, keepdims=True)
    mean_sq = jnp.mean(x * x, axis=-1, keepdims=True)
    var = jnp.maximum(mean_sq - mean * mean, 0.0)
    y = (x - mean) * jax.lax.rsqrt(var + eps)
    o_ref[...] = (y * g_ref[...] + b_ref[...]).astype(o_ref.dtype)


def layer_norm_pallas(x2d, gamma, beta, *, eps=1e-5, max_row_tile=1024):
    R, D = x2d.shape
    x_bytes = x2d.dtype.itemsize
    cap = _vmem_cap_bytes()

    def ln_bytes(t):
        return (4 * t * D * x_bytes    # in + out tiles, double-buffered
                + 4 * D * 4            # gamma/beta (1, D) f32, double-buffered
                + 3 * t * D * 4)       # f32 temporaries

    tm = _choose_row_tile(R, max_tile=max_row_tile)
    while ln_bytes(tm) > cap and tm > 8:
        tm = max(8, _round_up(tm // 2, 8))
    Rp = _round_up(R, tm)

    x_p = x2d if Rp == R else jnp.pad(x2d, ((0, Rp - R), (0, 0)))
    g = gamma.astype(jnp.float32).reshape(1, D)   # cast once, outside the loop
    bb = beta.astype(jnp.float32).reshape(1, D)

    vmem_limit = int(min(max(ln_bytes(tm) + (4 << 20), 32 << 20), cap))

    out = pl.pallas_call(
        functools.partial(_layernorm_kernel, eps=eps),
        out_shape=jax.ShapeDtypeStruct((Rp, D), x2d.dtype),
        grid_spec=pltpu.PrefetchScalarGridSpec(
            num_scalar_prefetch=0,
            grid=(Rp // tm,),
            in_specs=[
                pl.BlockSpec((tm, D), lambda i: (i, 0)),
                pl.BlockSpec((1, D), lambda i: (0, 0)),
                pl.BlockSpec((1, D), lambda i: (0, 0)),
            ],
            out_specs=pl.BlockSpec((tm, D), lambda i: (i, 0)),
        ),
        compiler_params=pltpu.CompilerParams(
            dimension_semantics=("parallel",),
            vmem_limit_bytes=vmem_limit,
        ),
    )(x_p, g, bb)
    return out[:R]


# --------------------------------------------------------------------------
# Standalone Pallas linear (used only when fn is called un-fused).
# Operands stay in their native dtype; accumulation is f32.
# --------------------------------------------------------------------------
def _linear_kernel(x_ref, w_ref, b_ref, o_ref):
    acc = jnp.dot(x_ref[...], w_ref[...], preferred_element_type=jnp.float32)
    o_ref[...] = (acc + b_ref[...]).astype(o_ref.dtype)


def linear_pallas(x2d, w, b, *, row_tile=256, col_tile=512):
    R, D = x2d.shape
    Dout = w.shape[1]
    x_bytes = x2d.dtype.itemsize
    w_bytes = w.dtype.itemsize
    cap = _vmem_cap_bytes()

    tm, tn = _plan_tiles(R, D, Dout, x_bytes, w_bytes, cap,
                         row_tile, col_tile, with_ln_scratch=False)
    Rp = _round_up(R, tm)
    Dp = _round_up(Dout, tn)

    x_p = x2d if Rp == R else jnp.pad(x2d, ((0, Rp - R), (0, 0)))
    w_p = w if Dp == Dout else jnp.pad(w, ((0, 0), (0, Dp - Dout)))
    b_p = (b if Dp == Dout else jnp.pad(b, ((0, Dp - Dout),)))
    b_p = b_p.astype(jnp.float32).reshape(1, Dp)

    est = _matmul_vmem_bytes(tm, D, tn, x_bytes, w_bytes, False)
    vmem_limit = int(min(max(est + (4 << 20), 32 << 20), cap))

    out = pl.pallas_call(
        _linear_kernel,
        out_shape=jax.ShapeDtypeStruct((Rp, Dp), x2d.dtype),
        grid_spec=pltpu.PrefetchScalarGridSpec(
            num_scalar_prefetch=0,
            grid=(Rp // tm, Dp // tn),
            in_specs=[
                pl.BlockSpec((tm, D), lambda i, j: (i, 0)),
                pl.BlockSpec((D, tn), lambda i, j: (0, j)),
                pl.BlockSpec((1, tn), lambda i, j: (0, j)),
            ],
            out_specs=pl.BlockSpec((tm, tn), lambda i, j: (i, j)),
        ),
        compiler_params=pltpu.CompilerParams(
            dimension_semantics=("parallel", "arbitrary"),
            vmem_limit_bytes=vmem_limit,
        ),
    )(x_p, w_p, b_p)
    return out[:R, :Dout]


# --------------------------------------------------------------------------
# PreNorm wrapper (mirrors the PyTorch module).
# --------------------------------------------------------------------------
class PallasLinear:
    """Linear fn whose composition with PreNorm is fused into one kernel."""

    def __init__(self, w, b):
        self.w = w
        self.b = b

    def __call__(self, y):
        B, N, D = y.shape
        out = linear_pallas(y.reshape(B * N, D), self.w, self.b)
        return out.reshape(B, N, -1)


class PreNorm:
    def __init__(self, dim, fn, eps=1e-5):
        self.dim = dim
        self.fn = fn
        # nn.LayerNorm default init: weight = 1, bias = 0, eps = 1e-5.
        self.gamma = jnp.ones((dim,), jnp.float32)
        self.beta = jnp.zeros((dim,), jnp.float32)
        self.eps = eps
        self._fold_cache = None   # (key, w_f, b_f) -- folded once, reused

    def _folded_linear(self):
        key = (id(self.gamma), id(self.beta), id(self.fn.w), id(self.fn.b))
        if self._fold_cache is None or self._fold_cache[0] != key:
            w_f, b_f = fold_layernorm_into_linear(
                self.gamma, self.beta, self.fn.w, self.fn.b)
            self._fold_cache = (key, w_f, b_f)
        return self._fold_cache[1], self._fold_cache[2]

    def __call__(self, x, **kwargs):
        B, N, D = x.shape
        x2d = x.reshape(B * N, D)
        if isinstance(self.fn, PallasLinear) and not kwargs:
            # Fused LayerNorm + linear with the LN affine folded into W/b.
            w_f, b_f = self._folded_linear()
            out2d = prenorm_linear_pallas(x2d, w_f, b_f, eps=self.eps)
            return out2d.reshape(B, N, -1)
        # Generic fn: standalone LN kernel, then the user callable.
        # TODO(synk): arbitrary wrapped fn modules (attention/MLP stacks) run
        # as their own ops; only the LayerNorm is a Pallas kernel here.
        y2d = layer_norm_pallas(x2d, self.gamma, self.beta, eps=self.eps)
        return self.fn(y2d.reshape(B, N, D), **kwargs)


if __name__ == "__main__":
    key = jax.random.PRNGKey(0)
    k_x, k_w, k_b, k_g, k_be, k_x2, k_w2, k_b2 = jax.random.split(key, 8)

    def ref_prenorm(x, gamma, beta, w, b, eps=1e-5):
        mean = jnp.mean(x, axis=-1, keepdims=True)
        var = jnp.mean((x - mean) ** 2, axis=-1, keepdims=True)
        y = (x - mean) / jnp.sqrt(var + eps) * gamma + beta
        return jnp.einsum("bnd,de->bne", y, w) + b

    # ---- f32 fused path --------------------------------------------------
    B, N, D, Dout = 2, 8, 128, 128
    x = jax.random.normal(k_x, (B, N, D), jnp.float32)
    w = jax.random.normal(k_w, (D, Dout), jnp.float32) * 0.02
    b = jax.random.normal(k_b, (Dout,), jnp.float32) * 0.02

    prenorm = PreNorm(D, PallasLinear(w, b))
    # Non-trivial affine params so the gamma/beta -> weight folding is tested.
    prenorm.gamma = 1.0 + 0.1 * jax.random.normal(k_g, (D,), jnp.float32)
    prenorm.beta = 0.1 * jax.random.normal(k_be, (D,), jnp.float32)

    out = jax.block_until_ready(prenorm(x))
    ref = ref_prenorm(x, prenorm.gamma, prenorm.beta, w, b)
    assert jnp.allclose(out, ref, atol=1e-4, rtol=1e-4), float(
        jnp.max(jnp.abs(out - ref)))

    # ---- generic (un-fused) path: LN kernel + standalone Pallas linear ----
    prenorm_generic = PreNorm(
        D, lambda y: linear_pallas(y.reshape(-1, D), w, b).reshape(B, N, Dout))
    prenorm_generic.gamma = prenorm.gamma
    prenorm_generic.beta = prenorm.beta
    out2 = jax.block_until_ready(prenorm_generic(x))
    assert jnp.allclose(out2, ref, atol=1e-4, rtol=1e-4), float(
        jnp.max(jnp.abs(out2 - ref)))

    # ---- bf16 fused path (native MXU operands, padded rows + columns) -----
    B2, N2, D2, Dout2 = 2, 13, 128, 192
    x_bf = jax.random.normal(k_x2, (B2, N2, D2), jnp.float32).astype(jnp.bfloat16)
    w_bf = (jax.random.normal(k_w2, (D2, Dout2), jnp.float32) * 0.02
            ).astype(jnp.bfloat16)
    b_bf = (jax.random.normal(k_b2, (Dout2,), jnp.float32) * 0.02
            ).astype(jnp.bfloat16)

    prenorm_bf = PreNorm(D2, PallasLinear(w_bf, b_bf))
    prenorm_bf.gamma = 1.0 + 0.1 * jax.random.normal(k_g, (D2,), jnp.float32)
    prenorm_bf.beta = 0.1 * jax.random.normal(k_be, (D2,), jnp.float32)

    out_bf = jax.block_until_ready(prenorm_bf(x_bf))
    ref_bf = ref_prenorm(x_bf.astype(jnp.float32), prenorm_bf.gamma,
                         prenorm_bf.beta, w_bf.astype(jnp.float32),
                         b_bf.astype(jnp.float32))
    err = float(jnp.max(jnp.abs(out_bf.astype(jnp.float32) - ref_bf)))
    assert err < 3e-2, err

    print("KERNEL_OK")
</pallas_src>

<mosaic_0001>
module attributes {stable_mosaic.version = 11 : i64} {
  func.func @_prenorm_linear_kernel(%arg0: i32, %arg1: i32, %arg2: memref<16x128xf32, #tpu.memory_space<vmem>>, %arg3: memref<128x128xf32, #tpu.memory_space<vmem>>, %arg4: memref<1x128xf32, #tpu.memory_space<vmem>>, %arg5: memref<16x128xf32, #tpu.memory_space<vmem>>, %arg6: memref<16x128xf32, #tpu.memory_space<vmem>>) attributes {dimension_semantics = [#tpu.dimension_semantics<parallel>, #tpu.dimension_semantics<arbitrary>], iteration_bounds = array<i64: 1, 1>, scalar_prefetch = 0 : i64, scratch_operands = 1 : i64, tpu.core_type = #tpu.core_type<tc>, window_params = [{transform_indices = @transform_0, window_bounds = array<i64: 16, 128>}, {transform_indices = @transform_1, window_bounds = array<i64: 128, 128>}, {transform_indices = @transform_2, window_bounds = array<i64: 1, 128>}, {transform_indices = @transform_3, window_bounds = array<i64: 16, 128>}]} {
    %c0_i32 = arith.constant 0 : i32
    %0 = arith.cmpi eq, %arg1, %c0_i32 : i32
    %1 = arith.extui %0 : i1 to i32
    %c0_i32_0 = arith.constant 0 : i32
    %2 = arith.cmpi ne, %1, %c0_i32_0 : i32
    scf.if %2 {
      %c0_8 = arith.constant 0 : index
      %c0_9 = arith.constant 0 : index
      %10 = vector.load %arg2[%c0_8, %c0_9] : memref<16x128xf32, #tpu.memory_space<vmem>>, vector<16x128xf32>
      %cst_10 = arith.constant dense<0.000000e+00> : vector<16xf32>
      %11 = vector.multi_reduction <add>, %10, %cst_10 [1] : vector<16x128xf32> to vector<16xf32>
      %12 = vector.shape_cast %11 : vector<16xf32> to vector<16x1xf32>
      %cst_11 = arith.constant 1.280000e+02 : f32
      %13 = vector.broadcast %cst_11 : f32 to vector<16x1xf32>
      %14 = arith.divf %12, %13 : vector<16x1xf32>
      %15 = arith.mulf %10, %10 : vector<16x128xf32>
      %cst_12 = arith.constant dense<0.000000e+00> : vector<16xf32>
      %16 = vector.multi_reduction <add>, %15, %cst_12 [1] : vector<16x128xf32> to vector<16xf32>
      %17 = vector.shape_cast %16 : vector<16xf32> to vector<16x1xf32>
      %cst_13 = arith.constant 1.280000e+02 : f32
      %18 = vector.broadcast %cst_13 : f32 to vector<16x1xf32>
      %19 = arith.divf %17, %18 : vector<16x1xf32>
      %20 = arith.mulf %14, %14 : vector<16x1xf32>
      %21 = arith.subf %19, %20 : vector<16x1xf32>
      %cst_14 = arith.constant 0.000000e+00 : f32
      %22 = vector.broadcast %cst_14 : f32 to vector<16x1xf32>
      %23 = arith.maximumf %21, %22 : vector<16x1xf32>
      %24 = vector.broadcast %14 : vector<16x1xf32> to vector<16x128xf32>
      %25 = arith.subf %10, %24 : vector<16x128xf32>
      %cst_15 = arith.constant 9.99999974E-6 : f32
      %26 = vector.broadcast %cst_15 : f32 to vector<16x1xf32>
      %27 = arith.addf %23, %26 : vector<16x1xf32>
      %28 = math.rsqrt %27 : vector<16x1xf32>
      %29 = vector.broadcast %28 : vector<16x1xf32> to vector<16x128xf32>
      %30 = arith.mulf %25, %29 : vector<16x128xf32>
      %c0_16 = arith.constant 0 : index
      %c0_17 = arith.constant 0 : index
      %31 = vector.load %arg6[%c0_16, %c0_17] : memref<16x128xf32, #tpu.memory_space<vmem>>, vector<16x128xf32>
      tpu.vector_store %arg6[%c0_16, %c0_17], %30 {strides = array<i32>} : memref<16x128xf32, #tpu.memory_space<vmem>>, vector<16x128xf32>,
    } else {
    }
    %c0 = arith.constant 0 : index
    %c0_1 = arith.constant 0 : index
    %3 = vector.load %arg6[%c0, %c0_1] : memref<16x128xf32, #tpu.memory_space<vmem>>, vector<16x128xf32>
    %c0_2 = arith.constant 0 : index
    %c0_3 = arith.constant 0 : index
    %4 = vector.load %arg3[%c0_2, %c0_3] : memref<128x128xf32, #tpu.memory_space<vmem>>, vector<128x128xf32>
    %cst = arith.constant dense<0.000000e+00> : vector<16x128xf32>
    %5 = tpu.matmul %3, %4, %cst {dimension_numbers = #tpu.dot_dimension_numbers<[1], [0], [0], [1], [0, 0, 1, 1], [], []>} : vector<16x128xf32>, vector<128x128xf32>, vector<16x128xf32> -> vector<16x128xf32>
    %c0_4 = arith.constant 0 : index
    %c0_5 = arith.constant 0 : index
    %6 = vector.load %arg4[%c0_4, %c0_5] : memref<1x128xf32, #tpu.memory_space<vmem>>, vector<1x128xf32>
    %7 = vector.broadcast %6 : vector<1x128xf32> to vector<16x128xf32>
    %8 = arith.addf %5, %7 : vector<16x128xf32>
    %c0_6 = arith.constant 0 : index
    %c0_7 = arith.constant 0 : index
    %9 = vector.load %arg5[%c0_6, %c0_7] : memref<16x128xf32, #tpu.memory_space<vmem>>, vector<16x128xf32>
    tpu.vector_store %arg5[%c0_6, %c0_7], %8 {strides = array<i32>} : memref<16x128xf32, #tpu.memory_space<vmem>>, vector<16x128xf32>,
    return
  }
  func.func @transform_0(%arg0: i32, %arg1: i32) -> (i32, i32) {
    %c0_i32 = arith.constant 0 : i32
    %c0_i32_0 = arith.constant 0 : i32
    return %arg0, %c0_i32 : i32, i32
  }
  func.func @transform_1(%arg0: i32, %arg1: i32) -> (i32, i32) {
    %c0_i32 = arith.constant 0 : i32
    %c0_i32_0 = arith.constant 0 : i32
    return %c0_i32, %arg1 : i32, i32
  }
  func.func @transform_2(%arg0: i32, %arg1: i32) -> (i32, i32) {
    %c0_i32 = arith.constant 0 : i32
    %c0_i32_0 = arith.constant 0 : i32
    return %c0_i32, %arg1 : i32, i32
  }
  func.func @transform_3(%arg0: i32, %arg1: i32) -> (i32, i32) {
    %c0_i32 = arith.constant 0 : i32
    return %arg0, %arg1 : i32, i32
  }
}

</mosaic_0001>

<bundles_post_ra>
// kernel: tpu_custom_call.1
= control target key start
LH: loop header
LB: loop body
LE: loop exit
PB: predicated region body
PF: predicated region fallthrough
CT: control target
= control target key end

     0   :  { %8 = vsyncpa [#allocation4], 0  ;;  %s452_s0 = inlined_call_operand.hbm [shape: f32[16,128], index: 0, kind: input, shape index: {}]   ;;  %s453_s1 = inlined_call_operand.hbm [shape: f32[128,128], index: 1, kind: input, shape index: {}]   ;;  %s454_s2 = inlined_call_operand.vmem [shape: f32[1,128], index: 2, kind: input, shape index: {}]   ;;  %s455_s3 = inlined_call_operand.hbm [shape: f32[16,128], index: 3, kind: output, shape index: {}]  }
   0x1   :  { %9 = vsyncpa [#allocation7], 0 }
   0x2   :  { %10 = vsyncpa [#allocation5], 0  ;;  %s367_s12 = smov [#allocation3]   ;;  %s295_s16 = scalar_lea.hbm %s452_s0, 256 }
   0x3   :  { %s16_s13 = sshll.u32 %s367_s12, 4  ;;  %p296_p0 = scmp.ne.s32.totalorder %s452_s0, %s295_s16  ;;  %s17_s13 = int_to_ptr.vmem [resolvable:$true] %s16_s13 }
   0x4   :  { %p299_p1 = scmp.lt.u32.totalorder %s295_s16, %s452_s0 }
   0x6   :  { %p301_p2 = pnand %p299_p1, %p296_p0 }
   0x8   :  { %304 = shalt.err (!%p301_p2)
}
   0x9   :  { %s305_s21 = scalar_lea.vmem %s17_s13, 256  ;;  %p310_p4 = scmp.lt.s32.totalorder %s17_s13, %s17_s13 }
   0xa   :  { %p306_p3 = scmp.ne.s32.totalorder %s17_s13, %s305_s21  ;;  %p311_p5 = scmp.lt.s32.totalorder %s305_s21, %s305_s21 }
   0xc   :  { %p312_p6 = por %p311_p5, %p310_p4 }
   0xe   :  { %p313_p7 = pnand %p312_p6, %p306_p3 }
  0x10   :  { %316 = shalt.err (!%p313_p7)
}
  0x11   :  { %s368_s22 = smov 128   ;;  %s369_s23 = smov 8  }
  0x12   :  { %22 = dma.hbm_to_vmem [thread:$0]  %s452_s0, 256, %s17_s13, [#allocation4], %s368_s22, %s368_s22, %s369_s23  }
  0x13   :  { %s370_s26 = smov [#allocation6]   ;;  %s317_s30 = scalar_lea.hbm %s453_s1, 2048 }
  0x14   :  { %s28_s27 = sshll.u32 %s370_s26, 4  ;;  %p318_p8 = scmp.ne.s32.totalorder %s453_s1, %s317_s30  ;;  %s29_s27 = int_to_ptr.vmem [resolvable:$true] %s28_s27 }
  0x15   :  { %p321_p9 = scmp.lt.u32.totalorder %s317_s30, %s453_s1 }
  0x17   :  { %p323_p10 = pnand %p321_p9, %p318_p8 }
  0x19   :  { %326 = shalt.err (!%p323_p10)
}
  0x1a   :  { %s327_s8 = scalar_lea.vmem %s29_s27, 2048  ;;  %p332_p12 = scmp.lt.s32.totalorder %s29_s27, %s29_s27 }
  0x1b   :  { %p328_p11 = scmp.ne.s32.totalorder %s29_s27, %s327_s8  ;;  %p333_p13 = scmp.lt.s32.totalorder %s327_s8, %s327_s8 }
  0x1d   :  { %p334_p0 = por %p333_p13, %p332_p12 }
  0x1f   :  { %p335_p1 = pnand %p334_p0, %p328_p11 }
  0x21   :  { %338 = shalt.err (!%p335_p1)
}
  0x22   :  { %34 = dma.hbm_to_vmem [thread:$0]  %s453_s1, 2048, %s29_s27, [#allocation7], %s368_s22, %s368_s22, %s369_s23  }
  0x23   :  { %361 = dma.done.wait [#allocation4], 256  }
  0x24   :  { %362 = vsyncadd [#allocation4], 4294967040 }
  0x25   :  { %363 = dma.done.wait [#allocation7], 2048  }
  0x26   :  { %364 = vsyncadd [#allocation7], 4294965248  ;;  %v422_v0 = vld [vmem:[#allocation3] sm:$0xff]  ;;  %v424_v1 = vld [vmem:[#allocation3 + $0x8] sm:$0xff]  ;;  %s371_s11 = smov [#allocation8]  }
  0x27   :  { %v82_v2 = vld [vmem:[#allocation6] sm:$0xff]  ;;  %49 = vadd.xlane.f32.xlu0 %v422_v0  ;;  %v56_v3 = vmul.f32 %v422_v0, %v422_v0  ;;  %v83_v4 = vld [vmem:[#allocation6 + $0x8] sm:$0xff]  ;;  %v84_v5 = vld [vmem:[#allocation6 + $0x10] sm:$0xff]  ;;  %v57_v9 = vmul.f32 %v424_v1, %v424_v1  ;;  %s187_s12 = sshll.u32 %s371_s11, 4  ;;  %s188_s12 = int_to_ptr.vmem [resolvable:$true] %s187_s12 }
  0x28   :  { %v85_v6 = vld [vmem:[#allocation6 + $0x18] sm:$0xff]  ;;  %v254_v7 = vpack.c.bf16 %v83_v4, %v82_v2  ;;  %v86_v10 = vld [vmem:[#allocation6 + $0x20] sm:$0xff]  ;;  %v87_v11 = vld [vmem:[#allocation6 + $0x28] sm:$0xff]  ;;  %s339_s13 = scalar_lea.vmem %s188_s12, 256  ;;  %p344_p3 = scmp.lt.s32.totalorder %s188_s12, %s188_s12 }
  0x29   :  { %v258_v8 = vpack.c.bf16 %v85_v6, %v84_v5  ;;  %58 = vadd.xlane.f32.xlu1 %v56_v3  ;;  %v262_v12 = vpack.c.bf16 %v87_v11, %v86_v10  ;;  %v88_v13 = vld [vmem:[#allocation6 + $0x30] sm:$0xff]  ;;  %v89_v14 = vld [vmem:[#allocation6 + $0x38] sm:$0xff]  ;;  %v90_v16 = vld [vmem:[#allocation6 + $0x40] sm:$0xff]  ;;  %p340_p2 = scmp.ne.s32.totalorder %s188_s12, %s339_s13  ;;  %p345_p4 = scmp.lt.s32.totalorder %s339_s13, %s339_s13 }
  0x2a   :  { %255 = vmatprep.subr.bf16.mxu0 %v254_v7  ;;  %v266_v15 = vpack.c.bf16 %v89_v14, %v88_v13  ;;  %v91_v17 = vld [vmem:[#allocation6 + $0x48] sm:$0xff]  ;;  %v92_v19 = vld [vmem:[#allocation6 + $0x50] sm:$0xff]  ;;  %v93_v20 = vld [vmem:[#allocation6 + $0x58] sm:$0xff] }
  0x2b   :  { %51 = vadd.xlane.f32.xlu0 %v424_v1  ;;  %257 = vmatpush3.bf16.msra.mxu0 %v254_v7  ;;  %v270_v18 = vpack.c.bf16 %v91_v17, %v90_v16  ;;  %v274_v21 = vpack.c.bf16 %v93_v20, %v92_v19  ;;  %v94_v22 = vld [vmem:[#allocation6 + $0x60] sm:$0xff]  ;;  %v95_v23 = vld [vmem:[#allocation6 + $0x68] sm:$0xff]  ;;  %v96_v24 = vld [vmem:[#allocation6 + $0x70] sm:$0xff]  ;;  %p346_p5 = por %p345_p4, %p344_p3 }
  0x2c   :  { %259 = vmatprep.subr.bf16.mxu0 %v258_v8  ;;  %v278_v25 = vpack.c.bf16 %v95_v23, %v94_v22  ;;  %v97_v26 = vld [vmem:[#allocation6 + $0x78] sm:$0xff]  ;;  %v200_v50 = vld [vmem:[%s454_s2] ss:$0 sm:$0xff] }
  0x2d   :  { %60 = vadd.xlane.f32.xlu1 %v57_v9  ;;  %v282_v27 = vpack.c.bf16 %v97_v26, %v96_v24  ;;  %p347_p6 = pnand %p346_p5, %p340_p2 }
  0x2f   :  { %261 = vmatpush3.bf16.msra.mxu0 %v258_v8 }
  0x30   :  { %263 = vmatprep.subr.bf16.mxu0 %v262_v12 }
  0x33   :  { %265 = vmatpush3.bf16.msra.mxu0 %v262_v12 }
  0x34   :  { %267 = vmatprep.subr.bf16.mxu0 %v266_v15 }
  0x37   :  { %269 = vmatpush3.bf16.msra.mxu0 %v266_v15 }
  0x38   :  { %271 = vmatprep.subr.bf16.mxu0 %v270_v18 }
  0x3b   :  { %273 = vmatpush3.bf16.msra.mxu0 %v270_v18 }
  0x3c   :  { %275 = vmatprep.subr.bf16.mxu0 %v274_v21 }
  0x3f   :  { %277 = vmatpush3.bf16.msra.mxu0 %v274_v21 }
  0x40   :  { %279 = vmatprep.subr.bf16.mxu0 %v278_v25 }
  0x43   :  { %281 = vmatpush3.bf16.msra.mxu0 %v278_v25 }
  0x44   :  { %283 = vmatprep.subr.bf16.mxu0 %v282_v27 }
  0x47   :  { %285 = vmatpush3.bf16.msra.mxu0 %v282_v27 }
  0xb4   :  { %v50_v28 = vpop.xlane.xlu0 %49 }
  0xb5   :  { %v54_v29 = vmul.f32 0.0078125, %v50_v28 }
  0xb6   :  { %v59_v30 = vpop.xlane.xlu1 %58 }
  0xb7   :  { %v64_v31 = vmul.f32 %v54_v29, %v54_v29  ;;  %v62_v32 = vmul.f32 0.0078125, %v59_v30  ;;  %v70_v44 = vsub.f32 %v422_v0, %v54_v29 }
  0xb8   :  { %v52_v33 = vpop.xlane.xlu0 %51 }
  0xb9   :  { %v66_v34 = vsub.f32 %v62_v32, %v64_v31  ;;  %v55_v35 = vmul.f32 0.0078125, %v52_v33 }
  0xba   :  { %v61_v36 = vpop.xlane.xlu1 %60 }
  0xbb   :  { %v68_v37 = vmax.f32 %v66_v34, 0.0  ;;  %v65_v38 = vmul.f32 %v55_v35, %v55_v35  ;;  %v63_v39 = vmul.f32 0.0078125, %v61_v36  ;;  %v71_v47 = vsub.f32 %v424_v1, %v55_v35 }
  0xbd   :  { %v72_v40 = vadd.f32 1e-05, %v68_v37  ;;  %v67_v41 = vsub.f32 %v63_v39, %v65_v38 }
  0xbf   :  { %291 = vrsqrt.f32 %v72_v40  ;;  %v69_v42 = vmax.f32 %v67_v41, 0.0 }
  0xc1   :  { %v73_v43 = vadd.f32 1e-05, %v69_v42 }
  0xc3   :  { %293 = vrsqrt.f32 %v73_v43 }
  0xc9   :  { %v292_v45 = vpop.eup %291 }
  0xca   :  { %v76_v46 = vmul.f32 %v292_v45, %v70_v44 }
  0xcc   :  { %251 = vmatprep.mubr.f32.mxu0 %v76_v46 }
  0xcd   :  { %v294_v48 = vpop.eup %293 }
  0xce   :  { %v77_v49 = vmul.f32 %v294_v48, %v71_v47 }
  0xd0   :  { %252 = vmatmul.mubr.f32.vlgmr.msra.gmra.mrb[0].mxu0 %v77_v49 }
 0x1a3   :  { %v253_v51 = vpop.f32.mrb[0].mxu0 }
 0x1a4   :  { %v177_v52 = vadd.f32 %v253_v51, %v200_v50  ;;  %v171_v53 = vpop.f32.mrb[1].mxu0 }
 0x1a5   :  { %v172_v54 = vadd.f32 %v200_v50, %v171_v53 }
 0x1a6   :  { %181 = vst [vmem:[#allocation8 + $0x8] sm:$0xff] %v177_v52 }
 0x1a7   :  { %180 = vst [vmem:[#allocation8] sm:$0xff] %v172_v54 }
 0x1a8   :  { %350 = shalt.err (!%p347_p6)
}
 0x1a9   :  { %s351_s2 = scalar_lea.hbm %s455_s3, 256 }
 0x1aa   :  { %p352_p7 = scmp.ne.s32.totalorder %s455_s3, %s351_s2  ;;  %p355_p8 = scmp.lt.u32.totalorder %s351_s2, %s455_s3 }
 0x1ac   :  { %p357_p9 = pnand %p355_p8, %p352_p7 }
 0x1ae   :  { %360 = shalt.err (!%p357_p9)
}
 0x1af   :  { %193 = dma.vmem_to_hbm [thread:$0]  %s188_s12, 256, %s455_s3, [#allocation5], %s368_s22, %s368_s22, %s369_s23  }
 0x1b0   :  { %365 = dma.done.wait [#allocation5], 256  }
 0x1b1   :  { %366 = vsyncadd [#allocation5], 4294967040 }
 0x1b2   :  { %197 = vsyncpa [#allocation4], 1 }
 0x1b3   :  { %198 = vsyncpa [#allocation7], 1 }
 0x1b4   :  { %199 = vsyncpa [#allocation5], 1 }

</bundles_post_ra>
